<compile_context>
chip_gen: v7x
topology: tpu7x:2x2x1
jax: 0.10.0
libtpu: 0.0.40
codegen_flags: <defaults>
</compile_context>

<pallas_src>
import math

import jax
import jax.numpy as jnp
from jax.experimental import pallas as pl
from jax.experimental.pallas import tpu as pltpu

LANE = 128
_MiB = 1024 * 1024


def _round_up(v, m):
    return ((v + m - 1) // m) * m


# ---------------------------------------------------------------------------
# Stage 1: support = x @ weight  (runs exactly once, tiled over rows)
# ---------------------------------------------------------------------------
def _support_kernel(x_ref, w_ref, o_ref):
    o_ref[...] = jnp.dot(
        x_ref[...], w_ref[...], preferred_element_type=jnp.float32
    ).astype(o_ref.dtype)


# ---------------------------------------------------------------------------
# Stage 2: out = adj @ support + bias   (grid = (row_tiles, k_tiles), k last)
# ---------------------------------------------------------------------------
def _make_aggregate_kernel(tk, n_valid, resident, mask_cols):
    """Builds the stage-2 kernel body for a static configuration.

    tk:        reduction tile size (multiple of 128).
    n_valid:   true N (valid adj columns); columns >= n_valid are masked.
    resident:  support is passed as one full VMEM-resident block.
    mask_cols: emit the column mask (only when N % tk != 0).
    """

    def kernel(adj_ref, sup_ref, b_ref, o_ref, acc_ref):
        k = pl.program_id(1)

        @pl.when(k == 0)
        def _():
            acc_ref[...] = jnp.zeros_like(acc_ref)

        adj_t = adj_ref[...]
        if mask_cols:
            # Partial last k-block: zero out-of-range adj columns so stale VMEM
            # contents in the padded region cannot pollute valid rows.
            col_ids = jax.lax.broadcasted_iota(jnp.int32, adj_t.shape, 1) + k * tk
            adj_t = jnp.where(col_ids < n_valid, adj_t, 0).astype(adj_t.dtype)

        if resident:
            start = pl.multiple_of(k * tk, LANE)
            sup_t = sup_ref[pl.ds(start, tk), :]
        else:
            sup_t = sup_ref[...]

        acc_ref[...] += jnp.dot(adj_t, sup_t, preferred_element_type=jnp.float32)

        @pl.when(k == pl.num_programs(1) - 1)
        def _():
            o_ref[...] = (acc_ref[...] + b_ref[...]).astype(o_ref.dtype)

    return kernel


def _choose_tiles(N, fout_p, adj_itemsize, out_itemsize, budget, sup_max):
    """Largest tm=tk (multiple of 128, <=2048) whose VMEM footprint fits."""
    n128 = _round_up(N, LANE)
    for cand in (2048, 1536, 1024, 768, 512, 384, 256, 128):
        t = min(cand, n128)
        n_sup = _round_up(N, t)
        sup_bytes = n_sup * fout_p * 4
        resident = sup_bytes <= sup_max
        footprint = (
            2 * t * t * adj_itemsize            # double-buffered adj tiles
            + t * fout_p * 4                    # f32 accumulator
            + 2 * t * fout_p * out_itemsize     # double-buffered output
            + (sup_bytes if resident else 2 * t * fout_p * 4)
        )
        if footprint <= budget:
            return t, t
    return LANE, LANE


def graph_convolution(x, adj, weight, bias=None, *, tm=None, tk=None,
                      vmem_budget_bytes=32 * _MiB,
                      support_resident_max_bytes=12 * _MiB):
    """GCN layer forward:  adj @ (x @ weight) + bias.

    x:      [N, Fin]
    adj:    [N, N] dense adjacency; streamed in its native dtype (pass bf16 to
            halve the dominant HBM stream; cast is amortized by the caller).
    weight: [Fin, Fout], bias: [Fout] or None.
    tm, tk: stage-2 row / reduction tile sizes (multiples of 128); default is
            chosen adaptively to fit `vmem_budget_bytes` (safe for v7x 64 MiB).
    """
    N, Fin = x.shape
    Fout = weight.shape[1]
    out_dtype = x.dtype

    if bias is None:
        bias = jnp.zeros((Fout,), dtype=jnp.float32)

    fin_p = _round_up(Fin, LANE)
    fout_p = _round_up(Fout, LANE)   # lane-dense output (no masked stores)

    if tm is None or tk is None:
        atm, atk = _choose_tiles(N, fout_p, adj.dtype.itemsize,
                                 jnp.dtype(out_dtype).itemsize,
                                 vmem_budget_bytes, support_resident_max_bytes)
        tm = atm if tm is None else tm
        tk = atk if tk is None else tk
    assert tm % LANE == 0 and tk % LANE == 0, "tile sizes must be multiples of 128"

    # support row count: multiple of tk so in-kernel k-slices are in-bounds;
    # padded rows of x are zero => padded support rows are exactly zero.
    n_sup = _round_up(N, tk)
    sup_bytes = n_sup * fout_p * 4
    resident = sup_bytes <= support_resident_max_bytes
    mask_cols = (N % tk) != 0

    # Small, cheap pads (N x Fin / Fin x Fout / Fout) — adj is NOT touched.
    xp = jnp.pad(x.astype(jnp.float32), ((0, n_sup - N), (0, fin_p - Fin)))
    wp = jnp.pad(weight.astype(jnp.float32), ((0, fin_p - Fin), (0, fout_p - Fout)))
    bp = jnp.pad(bias.astype(jnp.float32).reshape(1, Fout),
                 ((0, 0), (0, fout_p - Fout)))

    # ---- Stage 1: support = x @ w (f32, computed once). ----
    tm_s = next(c for c in (512, 256, 128) if n_sup % c == 0)
    support = pl.pallas_call(
        _support_kernel,
        out_shape=jax.ShapeDtypeStruct((n_sup, fout_p), jnp.float32),
        grid_spec=pltpu.PrefetchScalarGridSpec(
            num_scalar_prefetch=0,
            grid=(n_sup // tm_s,),
            in_specs=[
                pl.BlockSpec((tm_s, fin_p), lambda i: (i, 0)),
                pl.BlockSpec((fin_p, fout_p), lambda i: (0, 0)),
            ],
            out_specs=pl.BlockSpec((tm_s, fout_p), lambda i: (i, 0)),
        ),
        compiler_params=pltpu.CompilerParams(
            dimension_semantics=("parallel",),
            vmem_limit_bytes=32 * _MiB,
        ),
    )(xp, wp)

    # ---- Stage 2: out = adj @ support + bias. ----
    grid_m = pl.cdiv(N, tm)
    grid_k = pl.cdiv(N, tk)
    n_out = grid_m * tm              # full output blocks; sliced back below

    if resident:
        # Whole support matrix DMA'd once and kept in VMEM (constant index_map).
        sup_spec = pl.BlockSpec((n_sup, fout_p), lambda i, k: (0, 0))
    else:
        sup_spec = pl.BlockSpec((tk, fout_p), lambda i, k: (k, 0))

    out_p = pl.pallas_call(
        _make_aggregate_kernel(tk, N, resident, mask_cols),
        out_shape=jax.ShapeDtypeStruct((n_out, fout_p), out_dtype),
        grid_spec=pltpu.PrefetchScalarGridSpec(
            num_scalar_prefetch=0,
            grid=(grid_m, grid_k),                       # reduction axis last
            in_specs=[
                pl.BlockSpec((tm, tk), lambda i, k: (i, k)),   # adj tile (native dtype)
                sup_spec,                                       # support
                pl.BlockSpec((1, fout_p), lambda i, k: (0, 0)), # bias
            ],
            out_specs=pl.BlockSpec((tm, fout_p), lambda i, k: (i, 0)),
            scratch_shapes=[pltpu.VMEM((tm, fout_p), jnp.float32)],
        ),
        compiler_params=pltpu.CompilerParams(
            dimension_semantics=("parallel", "arbitrary"),
            vmem_limit_bytes=vmem_budget_bytes + 8 * _MiB,
        ),
    )(adj, support, bp)

    return out_p[:N, :Fout]


if __name__ == "__main__":
    in_features, out_features = 32, 16
    stdv = 1.0 / math.sqrt(out_features)

    key = jax.random.PRNGKey(0)
    k_w, k_b, k_x, k_adj = jax.random.split(key, 4)

    weight = jax.random.uniform(
        k_w, (in_features, out_features), jnp.float32, minval=-stdv, maxval=stdv)
    bias = jax.random.uniform(
        k_b, (out_features,), jnp.float32, minval=-stdv, maxval=stdv)

    def make_inputs(n, kx, ka):
        x = jax.random.uniform(kx, (n, in_features), jnp.float32)
        a = (jax.random.uniform(ka, (n, n)) < 0.2).astype(jnp.float32)
        a = a + jnp.eye(n, dtype=jnp.float32)            # self loops
        a = a / jnp.sum(a, axis=1, keepdims=True)        # row-normalize
        return x, a

    # --- Test 1: aligned N, default (adaptive) tiles, f32 adj, with bias. ---
    N1 = 256
    x1, adj1 = make_inputs(N1, k_x, k_adj)
    ref1 = adj1 @ (x1 @ weight) + bias
    out1 = jax.block_until_ready(graph_convolution(x1, adj1, weight, bias))
    assert out1.shape == (N1, out_features)
    assert jnp.allclose(out1, ref1, atol=1e-4, rtol=1e-4)

    # --- Test 2: ragged N (not a multiple of 128), small tiles -> multi-step
    #             k-reduction, partial adj blocks + column masking, bias=None. ---
    N2 = 200
    x2, adj2 = make_inputs(N2, k_adj, k_x)
    ref2 = adj2 @ (x2 @ weight)
    out2 = jax.block_until_ready(
        graph_convolution(x2, adj2, weight, None, tm=128, tk=128))
    assert out2.shape == (N2, out_features)
    assert jnp.allclose(out2, ref2, atol=1e-4, rtol=1e-4)

    # --- Test 3: caller-provided bf16 adjacency (amortized narrow HBM stream);
    #             support / accumulation stay f32. ---
    out3 = jax.block_until_ready(
        graph_convolution(x1, adj1.astype(jnp.bfloat16), weight, bias))
    assert out3.shape == (N1, out_features)
    assert jnp.allclose(out3, ref1, atol=2e-2, rtol=2e-2)

    print("KERNEL_OK")
</pallas_src>

<mosaic_0001>
module attributes {stable_mosaic.version = 11 : i64} {
  func.func @_support_kernel(%arg0: i32, %arg1: memref<256x128xf32, #tpu.memory_space<vmem>>, %arg2: memref<128x128xf32, #tpu.memory_space<vmem>>, %arg3: memref<256x128xf32, #tpu.memory_space<vmem>>) attributes {dimension_semantics = [#tpu.dimension_semantics<parallel>], iteration_bounds = array<i64: 1>, scalar_prefetch = 0 : i64, scratch_operands = 0 : i64, tpu.core_type = #tpu.core_type<tc>, window_params = [{transform_indices = @transform_0, window_bounds = array<i64: 256, 128>}, {pipeline_mode = #tpu.pipeline_mode<synchronous>, transform_indices = @transform_1, window_bounds = array<i64: 128, 128>}, {transform_indices = @transform_2, window_bounds = array<i64: 256, 128>}]} {
    %c0 = arith.constant 0 : index
    %c0_0 = arith.constant 0 : index
    %0 = vector.load %arg1[%c0, %c0_0] : memref<256x128xf32, #tpu.memory_space<vmem>>, vector<256x128xf32>
    %c0_1 = arith.constant 0 : index
    %c0_2 = arith.constant 0 : index
    %1 = vector.load %arg2[%c0_1, %c0_2] : memref<128x128xf32, #tpu.memory_space<vmem>>, vector<128x128xf32>
    %cst = arith.constant dense<0.000000e+00> : vector<256x128xf32>
    %2 = tpu.matmul %0, %1, %cst {dimension_numbers = #tpu.dot_dimension_numbers<[1], [0], [0], [1], [0, 0, 1, 1], [], []>} : vector<256x128xf32>, vector<128x128xf32>, vector<256x128xf32> -> vector<256x128xf32>
    %c0_3 = arith.constant 0 : index
    %c0_4 = arith.constant 0 : index
    %3 = vector.load %arg3[%c0_3, %c0_4] : memref<256x128xf32, #tpu.memory_space<vmem>>, vector<256x128xf32>
    tpu.vector_store %arg3[%c0_3, %c0_4], %2 {strides = array<i32>} : memref<256x128xf32, #tpu.memory_space<vmem>>, vector<256x128xf32>,
    return
  }
  func.func @transform_0(%arg0: i32) -> (i32, i32) {
    %c0_i32 = arith.constant 0 : i32
    %c0_i32_0 = arith.constant 0 : i32
    return %arg0, %c0_i32 : i32, i32
  }
  func.func @transform_1(%arg0: i32) -> (i32, i32) {
    %c0_i32 = arith.constant 0 : i32
    %c0_i32_0 = arith.constant 0 : i32
    %c0_i32_1 = arith.constant 0 : i32
    return %c0_i32, %c0_i32_0 : i32, i32
  }
  func.func @transform_2(%arg0: i32) -> (i32, i32) {
    %c0_i32 = arith.constant 0 : i32
    %c0_i32_0 = arith.constant 0 : i32
    return %arg0, %c0_i32 : i32, i32
  }
}

</mosaic_0001>

<bundles_post_ra>
// kernel: tpu_custom_call.1
= control target key start
LH: loop header
LB: loop body
LE: loop exit
PB: predicated region body
PF: predicated region fallthrough
CT: control target
= control target key end

     0   :  { %7 = vsyncpa [#allocation3], 0  ;;  %s681_s0 = inlined_call_operand.hbm [shape: f32[256,128], index: 0, kind: input, shape index: {}]   ;;  %s682_s1 = inlined_call_operand.hbm [shape: f32[128,128], index: 1, kind: input, shape index: {}]   ;;  %s683_s2 = inlined_call_operand.hbm [shape: f32[256,128], index: 2, kind: output, shape index: {}]  }
   0x1   :  { %8 = vsyncpa [#allocation6], 0 }
   0x2   :  { %9 = vsyncpa [#allocation4], 0  ;;  %s616_s9 = smov [#allocation2]   ;;  %s544_s13 = scalar_lea.hbm %s681_s0, 4096 }
   0x3   :  { %s15_s10 = sshll.u32 %s616_s9, 4  ;;  %p545_p0 = scmp.ne.s32.totalorder %s681_s0, %s544_s13  ;;  %s16_s10 = int_to_ptr.vmem [resolvable:$true] %s15_s10 }
   0x4   :  { %p548_p1 = scmp.lt.u32.totalorder %s544_s13, %s681_s0 }
   0x6   :  { %p550_p2 = pnand %p548_p1, %p545_p0 }
   0x8   :  { %553 = shalt.err (!%p550_p2)
}
   0x9   :  { %s554_s18 = scalar_lea.vmem %s16_s10, 4096  ;;  %p559_p4 = scmp.lt.s32.totalorder %s16_s10, %s16_s10 }
   0xa   :  { %p555_p3 = scmp.ne.s32.totalorder %s16_s10, %s554_s18  ;;  %p560_p5 = scmp.lt.s32.totalorder %s554_s18, %s554_s18 }
   0xc   :  { %p561_p6 = por %p560_p5, %p559_p4 }
   0xe   :  { %p562_p7 = pnand %p561_p6, %p555_p3 }
  0x10   :  { %565 = shalt.err (!%p562_p7)
}
  0x11   :  { %s617_s19 = smov 128   ;;  %s618_s20 = smov 8  }
  0x12   :  { %21 = dma.hbm_to_vmem [thread:$0]  %s681_s0, 4096, %s16_s10, [#allocation3], %s617_s19, %s617_s19, %s618_s20  }
  0x13   :  { %s619_s23 = smov [#allocation5]   ;;  %s566_s27 = scalar_lea.hbm %s682_s1, 2048 }
  0x14   :  { %s27_s24 = sshll.u32 %s619_s23, 4  ;;  %p567_p8 = scmp.ne.s32.totalorder %s682_s1, %s566_s27  ;;  %s28_s24 = int_to_ptr.vmem [resolvable:$true] %s27_s24 }
  0x15   :  { %p570_p9 = scmp.lt.u32.totalorder %s566_s27, %s682_s1 }
  0x17   :  { %p572_p10 = pnand %p570_p9, %p567_p8 }
  0x19   :  { %575 = shalt.err (!%p572_p10)
}
  0x1a   :  { %s576_s4 = scalar_lea.vmem %s28_s24, 2048  ;;  %p581_p12 = scmp.lt.s32.totalorder %s28_s24, %s28_s24 }
  0x1b   :  { %p577_p11 = scmp.ne.s32.totalorder %s28_s24, %s576_s4  ;;  %p582_p13 = scmp.lt.s32.totalorder %s576_s4, %s576_s4 }
  0x1d   :  { %p583_p0 = por %p582_p13, %p581_p12 }
  0x1f   :  { %p584_p1 = pnand %p583_p0, %p577_p11 }
  0x21   :  { %587 = shalt.err (!%p584_p1)
}
  0x22   :  { %33 = dma.hbm_to_vmem [thread:$0]  %s682_s1, 2048, %s28_s24, [#allocation6], %s617_s19, %s617_s19, %s618_s20  }
  0x23   :  { %610 = dma.done.wait [#allocation3], 4096  }
  0x24   :  { %611 = vsyncadd [#allocation3], 4294963200 }
  0x25   :  { %612 = dma.done.wait [#allocation6], 2048  }
  0x26   :  { %613 = vsyncadd [#allocation6], 4294965248  ;;  %v72_v0 = vld [vmem:[#allocation5] sm:$0xff]  ;;  %v73_v1 = vld [vmem:[#allocation5 + $0x8] sm:$0xff]  ;;  %s620_s1 = smov [#allocation7]  }
  0x27   :  { %v74_v2 = vld [vmem:[#allocation5 + $0x10] sm:$0xff]  ;;  %v491_v3 = vpack.c.bf16 %v73_v1, %v72_v0  ;;  %v75_v4 = vld [vmem:[#allocation5 + $0x18] sm:$0xff]  ;;  %v76_v6 = vld [vmem:[#allocation5 + $0x20] sm:$0xff]  ;;  %s350_s6 = sshll.u32 %s620_s1, 4  ;;  %s351_s6 = int_to_ptr.vmem [resolvable:$true] %s350_s6 }
  0x28   :  { %v495_v5 = vpack.c.bf16 %v75_v4, %v74_v2  ;;  %v77_v7 = vld [vmem:[#allocation5 + $0x28] sm:$0xff]  ;;  %v40_v9 = vld [vmem:[#allocation2] sm:$0xff]  ;;  %v78_v11 = vld [vmem:[#allocation5 + $0x30] sm:$0xff]  ;;  %s588_s7 = scalar_lea.vmem %s351_s6, 4096  ;;  %p593_p3 = scmp.lt.s32.totalorder %s351_s6, %s351_s6 }
  0x29   :  { %492 = vmatprep.subr.bf16.mxu0 %v491_v3  ;;  %523 = vmatprep.subr.bf16.mxu1 %v491_v3  ;;  %v499_v8 = vpack.c.bf16 %v77_v7, %v76_v6  ;;  %v56_v10 = vld [vmem:[#allocation2 + $0x80] sm:$0xff]  ;;  %v79_v12 = vld [vmem:[#allocation5 + $0x38] sm:$0xff]  ;;  %v81_v15 = vld [vmem:[#allocation5 + $0x48] sm:$0xff]  ;;  %p589_p2 = scmp.ne.s32.totalorder %s351_s6, %s588_s7  ;;  %p594_p4 = scmp.lt.s32.totalorder %s588_s7, %s588_s7 }
  0x2a   :  { %494 = vmatpush3.bf16.msra.mxu0 %v491_v3  ;;  %531 = vmatpush3.bf16.msra.mxu1 %v491_v3  ;;  %v503_v13 = vpack.c.bf16 %v79_v12, %v78_v11  ;;  %v80_v14 = vld [vmem:[#allocation5 + $0x40] sm:$0xff]  ;;  %v82_v17 = vld [vmem:[#allocation5 + $0x50] sm:$0xff]  ;;  %v83_v18 = vld [vmem:[#allocation5 + $0x58] sm:$0xff] }
  0x2b   :  { %496 = vmatprep.subr.bf16.mxu0 %v495_v5  ;;  %524 = vmatprep.subr.bf16.mxu1 %v495_v5  ;;  %v507_v16 = vpack.c.bf16 %v81_v15, %v80_v14  ;;  %v511_v19 = vpack.c.bf16 %v83_v18, %v82_v17  ;;  %v84_v20 = vld [vmem:[#allocation5 + $0x60] sm:$0xff]  ;;  %v85_v21 = vld [vmem:[#allocation5 + $0x68] sm:$0xff]  ;;  %v86_v23 = vld [vmem:[#allocation5 + $0x70] sm:$0xff]  ;;  %p595_p5 = por %p594_p4, %p593_p3 }
  0x2c   :  { %443 = vmatprep.mubr.f32.mxu0 %v40_v9  ;;  %467 = vmatprep.mubr.f32.mxu1 %v56_v10  ;;  %v515_v22 = vpack.c.bf16 %v85_v21, %v84_v20  ;;  %v87_v24 = vld [vmem:[#allocation5 + $0x78] sm:$0xff]  ;;  %v41_v26 = vld [vmem:[#allocation2 + $0x8] sm:$0xff]  ;;  %v42_v28 = vld [vmem:[#allocation2 + $0x10] sm:$0xff] }
  0x2d   :  { %v519_v25 = vpack.c.bf16 %v87_v24, %v86_v23  ;;  %v57_v27 = vld [vmem:[#allocation2 + $0x88] sm:$0xff]  ;;  %v58_v29 = vld [vmem:[#allocation2 + $0x90] sm:$0xff]  ;;  %v43_v30 = vld [vmem:[#allocation2 + $0x18] sm:$0xff]  ;;  %p596_p6 = pnand %p595_p5, %p589_p2 }
  0x2e   :  { %498 = vmatpush3.bf16.msra.mxu0 %v495_v5  ;;  %532 = vmatpush3.bf16.msra.mxu1 %v495_v5  ;;  %v59_v31 = vld [vmem:[#allocation2 + $0x98] sm:$0xff]  ;;  %v44_v32 = vld [vmem:[#allocation2 + $0x20] sm:$0xff]  ;;  %v45_v34 = vld [vmem:[#allocation2 + $0x28] sm:$0xff] }
  0x2f   :  { %500 = vmatprep.subr.bf16.mxu0 %v499_v8  ;;  %525 = vmatprep.subr.bf16.mxu1 %v499_v8  ;;  %v60_v33 = vld [vmem:[#allocation2 + $0xa0] sm:$0xff]  ;;  %v61_v35 = vld [vmem:[#allocation2 + $0xa8] sm:$0xff]  ;;  %v46_v36 = vld [vmem:[#allocation2 + $0x30] sm:$0xff] }
  0x30   :  { %v62_v37 = vld [vmem:[#allocation2 + $0xb0] sm:$0xff]  ;;  %v47_v38 = vld [vmem:[#allocation2 + $0x38] sm:$0xff]  ;;  %v48_v40 = vld [vmem:[#allocation2 + $0x40] sm:$0xff] }
  0x31   :  { %v63_v39 = vld [vmem:[#allocation2 + $0xb8] sm:$0xff]  ;;  %v64_v41 = vld [vmem:[#allocation2 + $0xc0] sm:$0xff]  ;;  %v49_v42 = vld [vmem:[#allocation2 + $0x48] sm:$0xff] }
  0x32   :  { %502 = vmatpush3.bf16.msra.mxu0 %v499_v8  ;;  %533 = vmatpush3.bf16.msra.mxu1 %v499_v8  ;;  %v65_v43 = vld [vmem:[#allocation2 + $0xc8] sm:$0xff]  ;;  %v50_v44 = vld [vmem:[#allocation2 + $0x50] sm:$0xff]  ;;  %v51_v46 = vld [vmem:[#allocation2 + $0x58] sm:$0xff] }
  0x33   :  { %504 = vmatprep.subr.bf16.mxu0 %v503_v13  ;;  %526 = vmatprep.subr.bf16.mxu1 %v503_v13  ;;  %v66_v45 = vld [vmem:[#allocation2 + $0xd0] sm:$0xff]  ;;  %v67_v47 = vld [vmem:[#allocation2 + $0xd8] sm:$0xff]  ;;  %v52_v48 = vld [vmem:[#allocation2 + $0x60] sm:$0xff] }
  0x34   :  { %v68_v49 = vld [vmem:[#allocation2 + $0xe0] sm:$0xff]  ;;  %v53_v50 = vld [vmem:[#allocation2 + $0x68] sm:$0xff]  ;;  %v54_v52 = vld [vmem:[#allocation2 + $0x70] sm:$0xff] }
  0x35   :  { %v69_v51 = vld [vmem:[#allocation2 + $0xe8] sm:$0xff]  ;;  %v70_v53 = vld [vmem:[#allocation2 + $0xf0] sm:$0xff]  ;;  %v55_v54 = vld [vmem:[#allocation2 + $0x78] sm:$0xff] }
  0x36   :  { %506 = vmatpush3.bf16.msra.mxu0 %v503_v13  ;;  %534 = vmatpush3.bf16.msra.mxu1 %v503_v13  ;;  %v71_v55 = vld [vmem:[#allocation2 + $0xf8] sm:$0xff] }
  0x37   :  { %508 = vmatprep.subr.bf16.mxu0 %v507_v16  ;;  %527 = vmatprep.subr.bf16.mxu1 %v507_v16 }
  0x3a   :  { %510 = vmatpush3.bf16.msra.mxu0 %v507_v16  ;;  %535 = vmatpush3.bf16.msra.mxu1 %v507_v16 }
  0x3b   :  { %512 = vmatprep.subr.bf16.mxu0 %v511_v19  ;;  %528 = vmatprep.subr.bf16.mxu1 %v511_v19 }
  0x3e   :  { %514 = vmatpush3.bf16.msra.mxu0 %v511_v19  ;;  %536 = vmatpush3.bf16.msra.mxu1 %v511_v19 }
  0x3f   :  { %516 = vmatprep.subr.bf16.mxu0 %v515_v22  ;;  %529 = vmatprep.subr.bf16.mxu1 %v515_v22 }
  0x42   :  { %518 = vmatpush3.bf16.msra.mxu0 %v515_v22  ;;  %537 = vmatpush3.bf16.msra.mxu1 %v515_v22 }
  0x43   :  { %520 = vmatprep.subr.bf16.mxu0 %v519_v25  ;;  %530 = vmatprep.subr.bf16.mxu1 %v519_v25 }
  0x46   :  { %522 = vmatpush3.bf16.msra.mxu0 %v519_v25  ;;  %538 = vmatpush3.bf16.msra.mxu1 %v519_v25 }
  0x49   :  { %444 = vmatmul.mubr.f32.vlgmr.msra.gmra.mrb[0].mxu0 %v41_v26  ;;  %468 = vmatmul.mubr.f32.vlgmr.msra.gmra.mrb[0].mxu1 %v57_v27 }
  0x4a   :  { %446 = vmatprep.mubr.f32.mxu0 %v42_v28  ;;  %470 = vmatprep.mubr.f32.mxu1 %v58_v29 }
  0x4d   :  { %447 = vmatmul.mubr.f32.gmra.mrb[2].mxu0 %v43_v30  ;;  %471 = vmatmul.mubr.f32.gmra.mrb[2].mxu1 %v59_v31 }
  0x4e   :  { %449 = vmatprep.mubr.f32.mxu0 %v44_v32  ;;  %473 = vmatprep.mubr.f32.mxu1 %v60_v33 }
  0x51   :  { %450 = vmatmul.mubr.f32.gmra.mrb[4].mxu0 %v45_v34  ;;  %474 = vmatmul.mubr.f32.gmra.mrb[4].mxu1 %v61_v35 }
  0x52   :  { %452 = vmatprep.mubr.f32.mxu0 %v46_v36  ;;  %476 = vmatprep.mubr.f32.mxu1 %v62_v37 }
  0x55   :  { %453 = vmatmul.mubr.f32.gmra.mrb[6].mxu0 %v47_v38  ;;  %477 = vmatmul.mubr.f32.gmra.mrb[6].mxu1 %v63_v39 }
  0x56   :  { %455 = vmatprep.mubr.f32.mxu0 %v48_v40  ;;  %479 = vmatprep.mubr.f32.mxu1 %v64_v41 }
  0x59   :  { %456 = vmatmul.mubr.f32.gmra.mrb[8].mxu0 %v49_v42  ;;  %480 = vmatmul.mubr.f32.gmra.mrb[8].mxu1 %v65_v43 }
  0x5a   :  { %458 = vmatprep.mubr.f32.mxu0 %v50_v44  ;;  %482 = vmatprep.mubr.f32.mxu1 %v66_v45 }
  0x5d   :  { %459 = vmatmul.mubr.f32.gmra.mrb[10].mxu0 %v51_v46  ;;  %483 = vmatmul.mubr.f32.gmra.mrb[10].mxu1 %v67_v47 }
  0x5e   :  { %461 = vmatprep.mubr.f32.mxu0 %v52_v48  ;;  %485 = vmatprep.mubr.f32.mxu1 %v68_v49 }
  0x61   :  { %462 = vmatmul.mubr.f32.gmra.mrb[12].mxu0 %v53_v50  ;;  %486 = vmatmul.mubr.f32.gmra.mrb[12].mxu1 %v69_v51 }
  0x62   :  { %464 = vmatprep.mubr.f32.mxu0 %v54_v52  ;;  %488 = vmatprep.mubr.f32.mxu1 %v70_v53 }
  0x65   :  { %465 = vmatmul.mubr.f32.gmra.mrb[14].mxu0 %v55_v54  ;;  %489 = vmatmul.mubr.f32.gmra.mrb[14].mxu1 %v71_v55 }
 0x11c   :  { %v445_v56 = vpop.f32.mrb[0].mxu0  ;;  %v469_v57 = vpop.f32.mrb[0].mxu1 }
 0x11d   :  { %314 = vst [vmem:[#allocation7 + $0x8] sm:$0xff] %v445_v56  ;;  %330 = vst [vmem:[#allocation7 + $0x88] sm:$0xff] %v469_v57  ;;  %v154_v58 = vpop.f32.mrb[1].mxu0  ;;  %v234_v59 = vpop.f32.mrb[1].mxu1 }
 0x11e   :  { %313 = vst [vmem:[#allocation7] sm:$0xff] %v154_v58  ;;  %329 = vst [vmem:[#allocation7 + $0x80] sm:$0xff] %v234_v59 }
 0x120   :  { %v448_v60 = vpop.f32.mrb[2].mxu0  ;;  %v472_v61 = vpop.f32.mrb[2].mxu1 }
 0x121   :  { %316 = vst [vmem:[#allocation7 + $0x18] sm:$0xff] %v448_v60  ;;  %332 = vst [vmem:[#allocation7 + $0x98] sm:$0xff] %v472_v61  ;;  %v164_v62 = vpop.f32.mrb[3].mxu0  ;;  %v244_v63 = vpop.f32.mrb[3].mxu1 }
 0x122   :  { %315 = vst [vmem:[#allocation7 + $0x10] sm:$0xff] %v164_v62  ;;  %331 = vst [vmem:[#allocation7 + $0x90] sm:$0xff] %v244_v63 }
 0x124   :  { %v451_v0 = vpop.f32.mrb[4].mxu0  ;;  %v475_v1 = vpop.f32.mrb[4].mxu1 }
 0x125   :  { %318 = vst [vmem:[#allocation7 + $0x28] sm:$0xff] %v451_v0  ;;  %334 = vst [vmem:[#allocation7 + $0xa8] sm:$0xff] %v475_v1  ;;  %v174_v2 = vpop.f32.mrb[5].mxu0  ;;  %v254_v3 = vpop.f32.mrb[5].mxu1 }
 0x126   :  { %317 = vst [vmem:[#allocation7 + $0x20] sm:$0xff] %v174_v2  ;;  %333 = vst [vmem:[#allocation7 + $0xa0] sm:$0xff] %v254_v3 }
 0x128   :  { %v454_v4 = vpop.f32.mrb[6].mxu0  ;;  %v478_v5 = vpop.f32.mrb[6].mxu1 }
 0x129   :  { %320 = vst [vmem:[#allocation7 + $0x38] sm:$0xff] %v454_v4  ;;  %336 = vst [vmem:[#allocation7 + $0xb8] sm:$0xff] %v478_v5  ;;  %v184_v6 = vpop.f32.mrb[7].mxu0  ;;  %v264_v7 = vpop.f32.mrb[7].mxu1 }
 0x12a   :  { %319 = vst [vmem:[#allocation7 + $0x30] sm:$0xff] %v184_v6  ;;  %335 = vst [vmem:[#allocation7 + $0xb0] sm:$0xff] %v264_v7 }
 0x12c   :  { %v457_v8 = vpop.f32.mrb[8].mxu0  ;;  %v481_v9 = vpop.f32.mrb[8].mxu1 }
 0x12d   :  { %322 = vst [vmem:[#allocation7 + $0x48] sm:$0xff] %v457_v8  ;;  %338 = vst [vmem:[#allocation7 + $0xc8] sm:$0xff] %v481_v9  ;;  %v194_v10 = vpop.f32.mrb[9].mxu0  ;;  %v274_v11 = vpop.f32.mrb[9].mxu1 }
 0x12e   :  { %321 = vst [vmem:[#allocation7 + $0x40] sm:$0xff] %v194_v10  ;;  %337 = vst [vmem:[#allocation7 + $0xc0] sm:$0xff] %v274_v11 }
 0x130   :  { %v460_v12 = vpop.f32.mrb[10].mxu0  ;;  %v484_v13 = vpop.f32.mrb[10].mxu1 }
 0x131   :  { %324 = vst [vmem:[#allocation7 + $0x58] sm:$0xff] %v460_v12  ;;  %340 = vst [vmem:[#allocation7 + $0xd8] sm:$0xff] %v484_v13  ;;  %v204_v14 = vpop.f32.mrb[11].mxu0  ;;  %v284_v15 = vpop.f32.mrb[11].mxu1 }
 0x132   :  { %323 = vst [vmem:[#allocation7 + $0x50] sm:$0xff] %v204_v14  ;;  %339 = vst [vmem:[#allocation7 + $0xd0] sm:$0xff] %v284_v15 }
 0x134   :  { %v463_v16 = vpop.f32.mrb[12].mxu0  ;;  %v487_v17 = vpop.f32.mrb[12].mxu1 }
 0x135   :  { %326 = vst [vmem:[#allocation7 + $0x68] sm:$0xff] %v463_v16  ;;  %342 = vst [vmem:[#allocation7 + $0xe8] sm:$0xff] %v487_v17  ;;  %v214_v18 = vpop.f32.mrb[13].mxu0  ;;  %v294_v19 = vpop.f32.mrb[13].mxu1 }
 0x136   :  { %325 = vst [vmem:[#allocation7 + $0x60] sm:$0xff] %v214_v18  ;;  %341 = vst [vmem:[#allocation7 + $0xe0] sm:$0xff] %v294_v19 }
 0x138   :  { %v466_v20 = vpop.f32.mrb[14].mxu0  ;;  %v490_v21 = vpop.f32.mrb[14].mxu1 }
 0x139   :  { %328 = vst [vmem:[#allocation7 + $0x78] sm:$0xff] %v466_v20  ;;  %344 = vst [vmem:[#allocation7 + $0xf8] sm:$0xff] %v490_v21  ;;  %v224_v22 = vpop.f32.mrb[15].mxu0  ;;  %v304_v23 = vpop.f32.mrb[15].mxu1 }
 0x13a   :  { %327 = vst [vmem:[#allocation7 + $0x70] sm:$0xff] %v224_v22  ;;  %343 = vst [vmem:[#allocation7 + $0xf0] sm:$0xff] %v304_v23 }
 0x13b   :  { %599 = shalt.err (!%p596_p6)
}
 0x13c   :  { %s600_s10 = scalar_lea.hbm %s683_s2, 4096 }
 0x13d   :  { %p601_p7 = scmp.ne.s32.totalorder %s683_s2, %s600_s10  ;;  %p604_p8 = scmp.lt.u32.totalorder %s600_s10, %s683_s2 }
 0x13f   :  { %p606_p9 = pnand %p604_p8, %p601_p7 }
 0x141   :  { %609 = shalt.err (!%p606_p9)
}
 0x142   :  { %356 = dma.vmem_to_hbm [thread:$0]  %s351_s6, 4096, %s683_s2, [#allocation4], %s617_s19, %s617_s19, %s618_s20  }
 0x143   :  { %614 = dma.done.wait [#allocation4], 4096  }
 0x144   :  { %615 = vsyncadd [#allocation4], 4294963200 }
 0x145   :  { %360 = vsyncpa [#allocation3], 1 }
 0x146   :  { %361 = vsyncpa [#allocation6], 1 }
 0x147   :  { %362 = vsyncpa [#allocation4], 1 }

</bundles_post_ra>
